<compile_context>
chip_gen: v7x
topology: tpu7x:2x2x1
jax: 0.10.0
libtpu: 0.0.40
codegen_flags: <defaults>
</compile_context>

<pallas_src>
import math
from functools import partial

import jax
import jax.numpy as jnp
from jax.experimental import pallas as pl
from jax.experimental.pallas import tpu as pltpu

LANES = 128
_TARGET_TILE_BYTES = 4 * 1024 * 1024   # ~4 MiB per x tile
_VMEM_LIMIT_BYTES = 48 << 20           # under v7x's 64 MiB/TC; raises v5e's 16 MiB default


def _make_pe(d_model: int, max_len: int = 512, dtype=jnp.float32) -> jnp.ndarray:
    """Sinusoidal positional-encoding buffer, shape (1, max_len, d_model).

    Matches the PyTorch module's buffer (handles odd d_model too).
    """
    position = jnp.arange(0, max_len, dtype=jnp.float32)[:, None]             # (L, 1)
    div_term = jnp.exp(
        jnp.arange(0, d_model, 2, dtype=jnp.float32) * (-math.log(10000.0) / d_model)
    )                                                                          # (ceil(D/2),)
    angles = position * div_term                                               # (L, ceil(D/2))
    pe = jnp.zeros((max_len, d_model), dtype=jnp.float32)
    pe = pe.at[:, 0::2].set(jnp.sin(angles))
    pe = pe.at[:, 1::2].set(jnp.cos(angles)[:, : d_model // 2])                # guard odd D
    return pe[None, :, :].astype(dtype)                                        # (1, L, D)


def _add_pe_kernel(x_ref, pe_ref, o_ref):
    # Elementwise add on a 2-D (rows, 128-lane) tile; PE tile shared across batch.
    o_ref[...] = (x_ref[...] + pe_ref[...]).astype(o_ref.dtype)


def _row_tile(R: int, itemsize: int, target_bytes: int) -> int:
    """Row-tile size for a (R, 128) lane-dense view."""
    pack = max(1, 4 // itemsize)          # rows packed per sublane (bf16=2, int8=4)
    sub_mult = 8 * pack                   # (8,128) rule x dtype packing
    tr = max(1, target_bytes // (LANES * itemsize))
    tr = min(R, tr)
    if R >= sub_mult:
        tr = max(sub_mult, (tr // sub_mult) * sub_mult)
        # v7x megacore: keep >= 2 tiles on the parallel row-tile axis when possible.
        if pl.cdiv(R, tr) < 2 and R > sub_mult:
            tr = max(sub_mult, (pl.cdiv(R, 2) // sub_mult) * sub_mult)
    return tr


def _add_pe_lane_dense(x_v: jnp.ndarray, pe_v: jnp.ndarray, tr: int,
                       *, alias_input: bool) -> jnp.ndarray:
    """x_v: (B, R, 128); pe_v: (R_pe >= R, 128). Returns x_v + pe_v[:R]."""
    B, R, _ = x_v.shape
    grid = (pl.cdiv(R, tr), B)            # row tiles OUTER (parallel), batch INNER
    alias = {0: 0} if alias_input else {}
    return pl.pallas_call(
        _add_pe_kernel,
        out_shape=jax.ShapeDtypeStruct((B, R, LANES), x_v.dtype),
        grid_spec=pltpu.PrefetchScalarGridSpec(
            num_scalar_prefetch=0,
            grid=grid,
            in_specs=[
                pl.BlockSpec((pl.Squeezed(), tr, LANES), lambda t, b: (b, t, 0)),
                # PE block index is constant over the inner batch sweep -> DMA'd
                # once per row tile; single-buffered to save one VMEM tile.
                pl.BlockSpec((tr, LANES), lambda t, b: (t, 0),
                             pipeline_mode=pl.Buffered(1)),
            ],
            out_specs=pl.BlockSpec((pl.Squeezed(), tr, LANES), lambda t, b: (b, t, 0)),
        ),
        input_output_aliases=alias,
        compiler_params=pltpu.CompilerParams(
            dimension_semantics=("parallel", "arbitrary"),
            vmem_limit_bytes=_VMEM_LIMIT_BYTES),
    )(x_v, pe_v)


def positional_encoding_forward(x: jnp.ndarray, pe: jnp.ndarray,
                                *, donate_x: bool = False) -> jnp.ndarray:
    """x: (B, S, D); pe: (1, max_len, D). Returns x + pe[:, :S, :].

    Set donate_x=True only if the caller donates x (jax.jit(..., donate_argnums));
    otherwise the in-place alias would force a defensive copy of x.
    """
    B, S, D = x.shape
    assert pe.ndim == 3 and pe.shape[0] == 1 and pe.shape[2] == D, "bad pe buffer shape"
    max_len = pe.shape[1]
    assert S <= max_len, f"seq len {S} exceeds pe max_len {max_len}"

    itemsize = jnp.dtype(x.dtype).itemsize

    if (S * D) % LANES == 0:
        # ---- lane-dense path: view each (S, D) slab as (R, 128) ----------------------
        R = (S * D) // LANES
        tr = _row_tile(R, itemsize, _TARGET_TILE_BYTES)
        x_v = x.reshape(B, R, LANES)
        use_full_pe = (
            pe.dtype == x.dtype
            and (max_len * D) % LANES == 0
            and (tr % 8 == 0 or (max_len * D) // LANES == R)  # keep (8,128) block rule
        )
        if use_full_pe:
            # No wrapper-side slice/cast HLO: the row-major prefix of the full buffer
            # is exactly pe[:, :S, :] flattened, and the index_map only touches it.
            pe_v = pe.reshape((max_len * D) // LANES, LANES)
        else:
            pe_v = pe[0, :S, :].astype(x.dtype).reshape(R, LANES)
        out = _add_pe_lane_dense(x_v, pe_v, tr, alias_input=donate_x)
        return out.reshape(B, S, D)

    # ---- pad-to-lane-dense path: D (hence S*D) not a multiple of 128 -----------------
    # Padding trades a little extra HBM traffic for unmasked full-lane stores.
    D_pad = ((D + LANES - 1) // LANES) * LANES
    x_p = jnp.pad(x, ((0, 0), (0, 0), (0, D_pad - D)))
    pe_p = jnp.pad(pe[0, :S, :].astype(x.dtype), ((0, 0), (0, D_pad - D)))
    R = (S * D_pad) // LANES
    tr = _row_tile(R, itemsize, _TARGET_TILE_BYTES)
    # The padded x is a dead intermediate, so aliasing it into the output is free.
    out = _add_pe_lane_dense(x_p.reshape(B, R, LANES), pe_p.reshape(R, LANES), tr,
                             alias_input=True)
    return out.reshape(B, S, D_pad)[..., :D]


if __name__ == "__main__":
    root = jax.random.PRNGKey(0)
    k1, k2, k3 = jax.random.split(root, 3)

    fwd = jax.jit(positional_encoding_forward)

    # Case 1: lane-dense path (S*D % 128 == 0), no donation.
    B, S, D, MAX_LEN = 2, 8, 32, 64
    x1 = jax.random.normal(k1, (B, S, D), dtype=jnp.float32)
    pe1 = _make_pe(D, MAX_LEN, dtype=x1.dtype)
    out1 = jax.block_until_ready(fwd(x1, pe1))
    ref1 = x1 + pe1[:, :S, :]
    assert out1.shape == (B, S, D)
    assert jnp.allclose(out1, ref1, atol=1e-6), "case1 mismatch"

    # Case 1b: donated / in-place path (alias only when x is actually donated).
    # Reference is already computed above (donated buffer must not be read afterwards).
    fwd_don = jax.jit(partial(positional_encoding_forward, donate_x=True),
                      donate_argnums=(0,))
    x1_don = jnp.array(x1)  # fresh copy to donate
    out1d = jax.block_until_ready(fwd_don(x1_don, pe1))
    assert jnp.allclose(out1d, ref1, atol=1e-6), "case1b (donated) mismatch"

    # Case 2: pad-to-lane-dense path (D not a multiple of 128).
    D2 = 20
    x2 = jax.random.normal(k2, (B, S, D2), dtype=jnp.float32)
    pe2 = _make_pe(D2, MAX_LEN, dtype=x2.dtype)
    out2 = jax.block_until_ready(fwd(x2, pe2))
    ref2 = x2 + pe2[:, :S, :]
    assert out2.shape == (B, S, D2)
    assert jnp.allclose(out2, ref2, atol=1e-6), "case2 mismatch"

    # Case 3: full-PE-buffer reuse path (no wrapper slice/cast), 2 row tiles.
    S3, D3 = 16, 128
    x3 = jax.random.normal(k3, (B, S3, D3), dtype=jnp.float32)
    pe3 = _make_pe(D3, MAX_LEN, dtype=x3.dtype)
    out3 = jax.block_until_ready(fwd(x3, pe3))
    ref3 = x3 + pe3[:, :S3, :]
    assert out3.shape == (B, S3, D3)
    assert jnp.allclose(out3, ref3, atol=1e-6), "case3 mismatch"

    print("KERNEL_OK")
</pallas_src>

<mosaic_0001>
module attributes {stable_mosaic.version = 11 : i64} {
  func.func @_add_pe_kernel(%arg0: i32, %arg1: i32, %arg2: memref<1x2x128xf32, #tpu.memory_space<vmem>>, %arg3: memref<2x128xf32, #tpu.memory_space<vmem>>, %arg4: memref<1x2x128xf32, #tpu.memory_space<vmem>>) attributes {dimension_semantics = [#tpu.dimension_semantics<parallel>, #tpu.dimension_semantics<arbitrary>], iteration_bounds = array<i64: 1, 2>, scalar_prefetch = 0 : i64, scratch_operands = 0 : i64, tpu.core_type = #tpu.core_type<tc>, window_params = [{transform_indices = @transform_0, window_bounds = array<i64: 1, 2, 128>}, {pipeline_mode = #tpu.pipeline_mode<synchronous>, transform_indices = @transform_1, window_bounds = array<i64: 2, 128>}, {transform_indices = @transform_2, window_bounds = array<i64: 1, 2, 128>}]} {
    %c0 = arith.constant 0 : index
    %c0_0 = arith.constant 0 : index
    %c0_1 = arith.constant 0 : index
    %0 = vector.load %arg2[%c0, %c0_0, %c0_1] : memref<1x2x128xf32, #tpu.memory_space<vmem>>, vector<1x2x128xf32>
    %1 = vector.shape_cast %0 : vector<1x2x128xf32> to vector<2x128xf32>
    %c0_2 = arith.constant 0 : index
    %c0_3 = arith.constant 0 : index
    %2 = vector.load %arg3[%c0_2, %c0_3] : memref<2x128xf32, #tpu.memory_space<vmem>>, vector<2x128xf32>
    %3 = arith.addf %1, %2 : vector<2x128xf32>
    %c0_4 = arith.constant 0 : index
    %c0_5 = arith.constant 0 : index
    %c0_6 = arith.constant 0 : index
    %4 = vector.load %arg4[%c0_4, %c0_5, %c0_6] : memref<1x2x128xf32, #tpu.memory_space<vmem>>, vector<1x2x128xf32>
    %5 = vector.shape_cast %4 : vector<1x2x128xf32> to vector<2x128xf32>
    %6 = vector.shape_cast %3 : vector<2x128xf32> to vector<1x2x128xf32>
    tpu.vector_store %arg4[%c0_4, %c0_5, %c0_6], %6 {strides = array<i32>} : memref<1x2x128xf32, #tpu.memory_space<vmem>>, vector<1x2x128xf32>,
    return
  }
  func.func @transform_0(%arg0: i32, %arg1: i32) -> (i32, i32, i32) {
    %c0_i32 = arith.constant 0 : i32
    %c0_i32_0 = arith.constant 0 : i32
    return %arg1, %arg0, %c0_i32 : i32, i32, i32
  }
  func.func @transform_1(%arg0: i32, %arg1: i32) -> (i32, i32) {
    %c0_i32 = arith.constant 0 : i32
    %c0_i32_0 = arith.constant 0 : i32
    return %arg0, %c0_i32 : i32, i32
  }
  func.func @transform_2(%arg0: i32, %arg1: i32) -> (i32, i32, i32) {
    %c0_i32 = arith.constant 0 : i32
    %c0_i32_0 = arith.constant 0 : i32
    return %arg1, %arg0, %c0_i32 : i32, i32, i32
  }
}

</mosaic_0001>

<bundles_post_ra>
// kernel: squeeze.1
= control target key start
LH: loop header
LB: loop body
LE: loop exit
PB: predicated region body
PF: predicated region fallthrough
CT: control target
= control target key end

     0   :  { %s7_s6 = smov 3  ;;  %s14_s9 = smov 3  ;;  %vm4_vm0 = vcmask 261120   ;;  %vm11_vm1 = vcmask 1048320   ;;  %vm18_vm2 = vcmask 785920   ;;  %vm25_vm3 = vcmask 523520   ;;  %s67_s0 = inlined_call_operand.vmem [shape: f32[1,8,32], index: 0, kind: input, shape index: {}]   ;;  %s68_s1 = inlined_call_operand.vmem [shape: f32[2,128], index: 1, kind: output, shape index: {}]  }
   0x1   :  { %v33_v0 = vld [vmem:[%s67_s0 + $0x3] ss:$4 sm:%s7_s6]   ;;  %s39_s10 = smov 96   ;;  %s21_s11 = smov 3  ;;  %v34_v1 = vld [vmem:[%s67_s0 + $0x2] ss:$4 sm:%s14_s9]  }
   0x2   :  { %9 = vrot.lane.b32.xlu0 %v33_v0, %s39_s10  ;;  %v35_v2 = vld [vmem:[%s67_s0 + $0x1] ss:$4 sm:%s21_s11]   ;;  %s2_s16 = smov 3  ;;  %s40_s17 = smov 32  }
   0x3   :  { %23 = vrot.lane.b32.xlu1 %v35_v2, %s40_s17  ;;  %v3_v3 = vld [vmem:[%s67_s0] ss:$4 sm:%s2_s16]   ;;  %s41_s0 = smov 64  }
   0x4   :  { %5 = vst.msk [vmem:[#allocation0] sm:$0x3] %vm4_vm0, %v3_v3  }
   0x6   :  { %16 = vrot.lane.b32.xlu0 %v34_v1, %s41_s0 }
  0x74   :  { %v10_v4 = vpop.permute.xlu0 %9  }
  0x75   :  { %12 = vst.msk [vmem:[#allocation0] sm:$0x3] %vm11_vm1, %v10_v4   ;;  %v24_v5 = vpop.permute.xlu1 %23  }
  0x78   :  { %v17_v6 = vpop.permute.xlu0 %16  }
  0x79   :  { %19 = vst.msk [vmem:[#allocation0] sm:$0x3] %vm18_vm2, %v17_v6  }
  0x7a   :  { %26 = vst.msk [vmem:[#allocation0] sm:$0x3] %vm25_vm3, %v24_v5  }
  0x81   :  { %v30_v7 = vld [vmem:[#allocation0] sm:$0x3] }
  0x82   :  { %32 = vst [vmem:[%s68_s1] sm:$0x3] %v30_v7 }

// kernel: positional_encoding_forward.1
= control target key start
LH: loop header
LB: loop body
LE: loop exit
PB: predicated region body
PF: predicated region fallthrough
CT: control target
= control target key end

     0   :  { %s354_s9 = smov 0   ;;  %s331_s10 = smov 0   ;;  %s368_s0 = inlined_call_operand.vmem [shape: f32[2,2,128], index: 0, kind: input, shape index: {}]   ;;  %s369_s1 = inlined_call_operand.vmem [shape: f32[2,128], index: 1, kind: input, shape index: {}]   ;;  %s370_s2 = inlined_call_operand.vmem [shape: f32[2,2,128], index: 2, kind: output, shape index: {}]  }
   0x1   :  { %s335_s11 = smov 0  }
   0x2 LB: > { %s21_s12 = sadd.s32 1, %s333_s10  ;;  %p286_p0 = scmp.ge.s32.totalorder %s337_s11, 1  ;;  %s337_s11 = sphi %s335_s11, %s12_s11   ;;  %s333_s10 = sphi %s331_s10, %s332_s10   ;;  %s329_s9 = sphi %s354_s9, %s371_s9  }
   0x3   : > { %p22_p1 = scmp.ge.s32.totalorder %s21_s12, 2  ;;  %p139_p2 = scmp.lt.s32.totalorder %s337_s11, 3 }
   0x5   : > { %s373_s12 = smov (%p22_p1, %s21_s12), 0  ;;  %p140_p3 = pnand %p286_p0, %p139_p2 }
   0x6   : > { %p169_p4 = scmp.lt.s32.totalorder (!%p140_p3), %s329_s9, 1  ;;  %v188_v0 = vld [vmem:[%s369_s1] sm:$0x3] (!%p140_p3) }
   0x7   : > { %143 = sbr.rel (%p140_p3) target bundleno = 21 (0x15), region = 28 }
   0xe   : > { %s375_s9 = smov (!%p169_p4, %s329_s9), 1 }
   0xf   : > { %s287_s13 = sshll.u32 %s375_s9, 1 }
  0x10   : > { %s175_s18 = scalar_lea.vmem %s368_s0, %s287_s13  ;;  %s186_s21 = scalar_lea.vmem %s370_s2, %s287_s13 }
  0x11   : > { %v187_v1 = vld [vmem:[%s175_s18] sm:$0x3] }
  0x12   : > { %v189_v2 = vadd.f32 %v188_v0, %v187_v1 }
  0x14   : > { %190 = vst [vmem:[%s186_s21] sm:$0x3] %v189_v2 }
  0x15 PF: > { %s12_s11 = sadd.s32 1, %s337_s11   ;;  %s371_s9 = smov %s333_s10 }
  0x16   : > { %p9_p5 = scmp.ge.s32.totalorder %s12_s11, 4   ;;  %s332_s10 = smov %s373_s12  }
  0x18   :  { %11 = sbr.rel (!%p9_p5) target bundleno = 2 (0x2), region = 61 }

</bundles_post_ra>
